<compile_context>
chip_gen: v5e
topology: v5e:2x2
jax: 0.10.0
libtpu: 0.0.40
codegen_flags: <defaults>
</compile_context>

<pallas_src>
import functools
import math

import jax
import jax.numpy as jnp
import numpy as np
from jax.experimental import pallas as pl
from jax.experimental.pallas import tpu as pltpu


def _blockify_kernel(x_ref, o_ref, *, k):
    # x_ref: (C, BH, k, nbw, k)  -- input slab, minor dims (nbw, k)
    # o_ref: (C, BH, nbw, k, k)  -- output slab, minor dims (k, k)
    # For a fixed intra-block row i, the remaining index order (c, bh, bw, j)
    # is identical on both sides, so the whole permutation is k slice copies.
    for i in range(k):
        o_ref[:, :, :, i, :] = x_ref[:, :, i, :, :]


def _pick_rows_per_block(nbh, bytes_per_row_block, target_bytes=2 << 20):
    """Largest divisor of nbh whose (in+out) slab stays under ~target_bytes."""
    best = 1
    for d in range(1, nbh + 1):
        if nbh % d == 0 and d * bytes_per_row_block <= max(
            target_bytes, bytes_per_row_block
        ):
            best = d
    return best


def blockify(x, block_size, flatten=False):
    """Pallas implementation of Blockify.forward. x: (N, C, H, W)."""
    N, C, H, W = x.shape
    k = int(block_size)
    pad_h = int(math.ceil(H / k) * k) - H
    pad_w = int(math.ceil(W / k) * k) - W
    nbh = (H + pad_h) // k
    nbw = (W + pad_w) // k

    # Literal translation of F.pad(x, (0, pad_h, 0, pad_w), 'replicate'):
    # torch pads the LAST dim (W) with pad_h and dim -2 (H) with pad_w.
    if pad_h or pad_w:
        canvas = jnp.pad(x, ((0, 0), (0, 0), (0, pad_w), (0, pad_h)), mode="edge")
    else:
        canvas = x
    # The reference reinterprets the canvas row-major as (nbh, k, nbw, k);
    # expose that factorization wrapper-side (free metadata-only reshape) so
    # the kernel block's minor dims equal the full array dims.
    xr = canvas.reshape(N, C, nbh, k, nbw, k)

    elem = jnp.dtype(x.dtype).itemsize
    bytes_per_row_block = 2 * C * k * nbw * k * elem  # in + out per bh-slab
    bh_per_blk = _pick_rows_per_block(nbh, bytes_per_row_block)
    grid = (N, nbh // bh_per_blk)

    out6 = pl.pallas_call(
        functools.partial(_blockify_kernel, k=k),
        out_shape=jax.ShapeDtypeStruct((N, C, nbh, nbw, k, k), x.dtype),
        grid=grid,
        in_specs=[
            pl.BlockSpec(
                (None, C, bh_per_blk, k, nbw, k),
                lambda n, r: (n, 0, r, 0, 0, 0),
            ),
        ],
        out_specs=pl.BlockSpec(
            (None, C, bh_per_blk, nbw, k, k),
            lambda n, r: (n, 0, r, 0, 0, 0),
        ),
        compiler_params=pltpu.CompilerParams(
            dimension_semantics=("parallel", "parallel"),
        ),
    )(xr)

    if flatten:
        return out6.reshape(N, C, nbh, nbw, k * k)
    return out6


def blockify_ref(x, block_size, flatten=False):
    """Pure-JAX reference matching the PyTorch forward exactly."""
    N, C, H, W = x.shape
    k = int(block_size)
    pad_h = int(math.ceil(H / k) * k) - H
    pad_w = int(math.ceil(W / k) * k) - W
    nbh = (H + pad_h) // k
    nbw = (W + pad_w) // k
    canvas = jnp.pad(x, ((0, 0), (0, 0), (0, pad_w), (0, pad_h)), mode="edge")
    canvas = canvas.reshape(N, C, nbh, k, nbw, k)
    res = jnp.transpose(canvas, (0, 1, 2, 4, 3, 5))
    if flatten:
        return res.reshape(N, C, nbh, nbw, k * k)
    return res


if __name__ == "__main__":
    key = jax.random.PRNGKey(0)
    k1, k2 = jax.random.split(key)

    # Case 1: divisible spatial dims (no padding), default flatten=False.
    x1 = jax.random.uniform(k1, (2, 4, 16, 16), dtype=jnp.float32)
    out1 = jax.block_until_ready(blockify(x1, block_size=8))
    ref1 = blockify_ref(x1, block_size=8)
    np.testing.assert_allclose(np.asarray(out1), np.asarray(ref1), rtol=0, atol=0)

    # Case 2: non-divisible dims -> replicate-padding path, flatten=True.
    x2 = jax.random.uniform(k2, (1, 3, 12, 20), dtype=jnp.float32)
    out2 = jax.block_until_ready(blockify(x2, block_size=8, flatten=True))
    ref2 = blockify_ref(x2, block_size=8, flatten=True)
    np.testing.assert_allclose(np.asarray(out2), np.asarray(ref2), rtol=0, atol=0)

    print("KERNEL_OK")
</pallas_src>

<mosaic_0001>
module attributes {stable_mosaic.version = 11 : i64} {
  func.func @_blockify_kernel(%arg0: i32, %arg1: i32, %arg2: memref<1x4x2x8x2x8xf32, #tpu.memory_space<vmem>>, %arg3: memref<1x4x2x2x8x8xf32, #tpu.memory_space<vmem>>) attributes {dimension_semantics = [#tpu.dimension_semantics<parallel>, #tpu.dimension_semantics<parallel>], iteration_bounds = array<i64: 2, 1>, scalar_prefetch = 0 : i64, scratch_operands = 0 : i64, tpu.core_type = #tpu.core_type<tc>, window_params = [{transform_indices = @transform_0, window_bounds = array<i64: 1, 4, 2, 8, 2, 8>}, {transform_indices = @transform_1, window_bounds = array<i64: 1, 4, 2, 2, 8, 8>}]} {
    %c0 = arith.constant 0 : index
    %c0_0 = arith.constant 0 : index
    %c0_1 = arith.constant 0 : index
    %c0_2 = arith.constant 0 : index
    %c0_3 = arith.constant 0 : index
    %c0_4 = arith.constant 0 : index
    %0 = vector.load %arg2[%c0, %c0_0, %c0_1, %c0_2, %c0_3, %c0_4] : memref<1x4x2x8x2x8xf32, #tpu.memory_space<vmem>>, vector<1x4x2x1x2x8xf32>
    %1 = vector.shape_cast %0 : vector<1x4x2x1x2x8xf32> to vector<4x2x2x8xf32>
    %c0_5 = arith.constant 0 : index
    %c0_6 = arith.constant 0 : index
    %c0_7 = arith.constant 0 : index
    %c0_8 = arith.constant 0 : index
    %c0_9 = arith.constant 0 : index
    %c0_10 = arith.constant 0 : index
    %2 = vector.load %arg3[%c0_5, %c0_6, %c0_7, %c0_8, %c0_9, %c0_10] : memref<1x4x2x2x8x8xf32, #tpu.memory_space<vmem>>, vector<1x4x2x2x1x8xf32>
    %3 = vector.shape_cast %2 : vector<1x4x2x2x1x8xf32> to vector<4x2x2x8xf32>
    %4 = vector.shape_cast %1 : vector<4x2x2x8xf32> to vector<1x4x2x2x1x8xf32>
    tpu.vector_store %arg3[%c0_5, %c0_6, %c0_7, %c0_8, %c0_9, %c0_10], %4 {strides = array<i32>} : memref<1x4x2x2x8x8xf32, #tpu.memory_space<vmem>>, vector<1x4x2x2x1x8xf32>,
    %c0_11 = arith.constant 0 : index
    %c0_12 = arith.constant 0 : index
    %c0_13 = arith.constant 0 : index
    %c1 = arith.constant 1 : index
    %c0_14 = arith.constant 0 : index
    %c0_15 = arith.constant 0 : index
    %5 = vector.load %arg2[%c0_11, %c0_12, %c0_13, %c1, %c0_14, %c0_15] : memref<1x4x2x8x2x8xf32, #tpu.memory_space<vmem>>, vector<1x4x2x1x2x8xf32>
    %6 = vector.shape_cast %5 : vector<1x4x2x1x2x8xf32> to vector<4x2x2x8xf32>
    %c0_16 = arith.constant 0 : index
    %c0_17 = arith.constant 0 : index
    %c0_18 = arith.constant 0 : index
    %c0_19 = arith.constant 0 : index
    %c1_20 = arith.constant 1 : index
    %c0_21 = arith.constant 0 : index
    %7 = vector.load %arg3[%c0_16, %c0_17, %c0_18, %c0_19, %c1_20, %c0_21] : memref<1x4x2x2x8x8xf32, #tpu.memory_space<vmem>>, vector<1x4x2x2x1x8xf32>
    %8 = vector.shape_cast %7 : vector<1x4x2x2x1x8xf32> to vector<4x2x2x8xf32>
    %9 = vector.shape_cast %6 : vector<4x2x2x8xf32> to vector<1x4x2x2x1x8xf32>
    tpu.vector_store %arg3[%c0_16, %c0_17, %c0_18, %c0_19, %c1_20, %c0_21], %9 {strides = array<i32>} : memref<1x4x2x2x8x8xf32, #tpu.memory_space<vmem>>, vector<1x4x2x2x1x8xf32>,
    %c0_22 = arith.constant 0 : index
    %c0_23 = arith.constant 0 : index
    %c0_24 = arith.constant 0 : index
    %c2 = arith.constant 2 : index
    %c0_25 = arith.constant 0 : index
    %c0_26 = arith.constant 0 : index
    %10 = vector.load %arg2[%c0_22, %c0_23, %c0_24, %c2, %c0_25, %c0_26] : memref<1x4x2x8x2x8xf32, #tpu.memory_space<vmem>>, vector<1x4x2x1x2x8xf32>
    %11 = vector.shape_cast %10 : vector<1x4x2x1x2x8xf32> to vector<4x2x2x8xf32>
    %c0_27 = arith.constant 0 : index
    %c0_28 = arith.constant 0 : index
    %c0_29 = arith.constant 0 : index
    %c0_30 = arith.constant 0 : index
    %c2_31 = arith.constant 2 : index
    %c0_32 = arith.constant 0 : index
    %12 = vector.load %arg3[%c0_27, %c0_28, %c0_29, %c0_30, %c2_31, %c0_32] : memref<1x4x2x2x8x8xf32, #tpu.memory_space<vmem>>, vector<1x4x2x2x1x8xf32>
    %13 = vector.shape_cast %12 : vector<1x4x2x2x1x8xf32> to vector<4x2x2x8xf32>
    %14 = vector.shape_cast %11 : vector<4x2x2x8xf32> to vector<1x4x2x2x1x8xf32>
    tpu.vector_store %arg3[%c0_27, %c0_28, %c0_29, %c0_30, %c2_31, %c0_32], %14 {strides = array<i32>} : memref<1x4x2x2x8x8xf32, #tpu.memory_space<vmem>>, vector<1x4x2x2x1x8xf32>,
    %c0_33 = arith.constant 0 : index
    %c0_34 = arith.constant 0 : index
    %c0_35 = arith.constant 0 : index
    %c3 = arith.constant 3 : index
    %c0_36 = arith.constant 0 : index
    %c0_37 = arith.constant 0 : index
    %15 = vector.load %arg2[%c0_33, %c0_34, %c0_35, %c3, %c0_36, %c0_37] : memref<1x4x2x8x2x8xf32, #tpu.memory_space<vmem>>, vector<1x4x2x1x2x8xf32>
    %16 = vector.shape_cast %15 : vector<1x4x2x1x2x8xf32> to vector<4x2x2x8xf32>
    %c0_38 = arith.constant 0 : index
    %c0_39 = arith.constant 0 : index
    %c0_40 = arith.constant 0 : index
    %c0_41 = arith.constant 0 : index
    %c3_42 = arith.constant 3 : index
    %c0_43 = arith.constant 0 : index
    %17 = vector.load %arg3[%c0_38, %c0_39, %c0_40, %c0_41, %c3_42, %c0_43] : memref<1x4x2x2x8x8xf32, #tpu.memory_space<vmem>>, vector<1x4x2x2x1x8xf32>
    %18 = vector.shape_cast %17 : vector<1x4x2x2x1x8xf32> to vector<4x2x2x8xf32>
    %19 = vector.shape_cast %16 : vector<4x2x2x8xf32> to vector<1x4x2x2x1x8xf32>
    tpu.vector_store %arg3[%c0_38, %c0_39, %c0_40, %c0_41, %c3_42, %c0_43], %19 {strides = array<i32>} : memref<1x4x2x2x8x8xf32, #tpu.memory_space<vmem>>, vector<1x4x2x2x1x8xf32>,
    %c0_44 = arith.constant 0 : index
    %c0_45 = arith.constant 0 : index
    %c0_46 = arith.constant 0 : index
    %c4 = arith.constant 4 : index
    %c0_47 = arith.constant 0 : index
    %c0_48 = arith.constant 0 : index
    %20 = vector.load %arg2[%c0_44, %c0_45, %c0_46, %c4, %c0_47, %c0_48] : memref<1x4x2x8x2x8xf32, #tpu.memory_space<vmem>>, vector<1x4x2x1x2x8xf32>
    %21 = vector.shape_cast %20 : vector<1x4x2x1x2x8xf32> to vector<4x2x2x8xf32>
    %c0_49 = arith.constant 0 : index
    %c0_50 = arith.constant 0 : index
    %c0_51 = arith.constant 0 : index
    %c0_52 = arith.constant 0 : index
    %c4_53 = arith.constant 4 : index
    %c0_54 = arith.constant 0 : index
    %22 = vector.load %arg3[%c0_49, %c0_50, %c0_51, %c0_52, %c4_53, %c0_54] : memref<1x4x2x2x8x8xf32, #tpu.memory_space<vmem>>, vector<1x4x2x2x1x8xf32>
    %23 = vector.shape_cast %22 : vector<1x4x2x2x1x8xf32> to vector<4x2x2x8xf32>
    %24 = vector.shape_cast %21 : vector<4x2x2x8xf32> to vector<1x4x2x2x1x8xf32>
    tpu.vector_store %arg3[%c0_49, %c0_50, %c0_51, %c0_52, %c4_53, %c0_54], %24 {strides = array<i32>} : memref<1x4x2x2x8x8xf32, #tpu.memory_space<vmem>>, vector<1x4x2x2x1x8xf32>,
    %c0_55 = arith.constant 0 : index
    %c0_56 = arith.constant 0 : index
    %c0_57 = arith.constant 0 : index
    %c5 = arith.constant 5 : index
    %c0_58 = arith.constant 0 : index
    %c0_59 = arith.constant 0 : index
    %25 = vector.load %arg2[%c0_55, %c0_56, %c0_57, %c5, %c0_58, %c0_59] : memref<1x4x2x8x2x8xf32, #tpu.memory_space<vmem>>, vector<1x4x2x1x2x8xf32>
    %26 = vector.shape_cast %25 : vector<1x4x2x1x2x8xf32> to vector<4x2x2x8xf32>
    %c0_60 = arith.constant 0 : index
    %c0_61 = arith.constant 0 : index
    %c0_62 = arith.constant 0 : index
    %c0_63 = arith.constant 0 : index
    %c5_64 = arith.constant 5 : index
    %c0_65 = arith.constant 0 : index
    %27 = vector.load %arg3[%c0_60, %c0_61, %c0_62, %c0_63, %c5_64, %c0_65] : memref<1x4x2x2x8x8xf32, #tpu.memory_space<vmem>>, vector<1x4x2x2x1x8xf32>
    %28 = vector.shape_cast %27 : vector<1x4x2x2x1x8xf32> to vector<4x2x2x8xf32>
    %29 = vector.shape_cast %26 : vector<4x2x2x8xf32> to vector<1x4x2x2x1x8xf32>
    tpu.vector_store %arg3[%c0_60, %c0_61, %c0_62, %c0_63, %c5_64, %c0_65], %29 {strides = array<i32>} : memref<1x4x2x2x8x8xf32, #tpu.memory_space<vmem>>, vector<1x4x2x2x1x8xf32>,
    %c0_66 = arith.constant 0 : index
    %c0_67 = arith.constant 0 : index
    %c0_68 = arith.constant 0 : index
    %c6 = arith.constant 6 : index
    %c0_69 = arith.constant 0 : index
    %c0_70 = arith.constant 0 : index
    %30 = vector.load %arg2[%c0_66, %c0_67, %c0_68, %c6, %c0_69, %c0_70] : memref<1x4x2x8x2x8xf32, #tpu.memory_space<vmem>>, vector<1x4x2x1x2x8xf32>
    %31 = vector.shape_cast %30 : vector<1x4x2x1x2x8xf32> to vector<4x2x2x8xf32>
    %c0_71 = arith.constant 0 : index
    %c0_72 = arith.constant 0 : index
    %c0_73 = arith.constant 0 : index
    %c0_74 = arith.constant 0 : index
    %c6_75 = arith.constant 6 : index
    %c0_76 = arith.constant 0 : index
    %32 = vector.load %arg3[%c0_71, %c0_72, %c0_73, %c0_74, %c6_75, %c0_76] : memref<1x4x2x2x8x8xf32, #tpu.memory_space<vmem>>, vector<1x4x2x2x1x8xf32>
    %33 = vector.shape_cast %32 : vector<1x4x2x2x1x8xf32> to vector<4x2x2x8xf32>
    %34 = vector.shape_cast %31 : vector<4x2x2x8xf32> to vector<1x4x2x2x1x8xf32>
    tpu.vector_store %arg3[%c0_71, %c0_72, %c0_73, %c0_74, %c6_75, %c0_76], %34 {strides = array<i32>} : memref<1x4x2x2x8x8xf32, #tpu.memory_space<vmem>>, vector<1x4x2x2x1x8xf32>,
    %c0_77 = arith.constant 0 : index
    %c0_78 = arith.constant 0 : index
    %c0_79 = arith.constant 0 : index
    %c7 = arith.constant 7 : index
    %c0_80 = arith.constant 0 : index
    %c0_81 = arith.constant 0 : index
    %35 = vector.load %arg2[%c0_77, %c0_78, %c0_79, %c7, %c0_80, %c0_81] : memref<1x4x2x8x2x8xf32, #tpu.memory_space<vmem>>, vector<1x4x2x1x2x8xf32>
    %36 = vector.shape_cast %35 : vector<1x4x2x1x2x8xf32> to vector<4x2x2x8xf32>
    %c0_82 = arith.constant 0 : index
    %c0_83 = arith.constant 0 : index
    %c0_84 = arith.constant 0 : index
    %c0_85 = arith.constant 0 : index
    %c7_86 = arith.constant 7 : index
    %c0_87 = arith.constant 0 : index
    %37 = vector.load %arg3[%c0_82, %c0_83, %c0_84, %c0_85, %c7_86, %c0_87] : memref<1x4x2x2x8x8xf32, #tpu.memory_space<vmem>>, vector<1x4x2x2x1x8xf32>
    %38 = vector.shape_cast %37 : vector<1x4x2x2x1x8xf32> to vector<4x2x2x8xf32>
    %39 = vector.shape_cast %36 : vector<4x2x2x8xf32> to vector<1x4x2x2x1x8xf32>
    tpu.vector_store %arg3[%c0_82, %c0_83, %c0_84, %c0_85, %c7_86, %c0_87], %39 {strides = array<i32>} : memref<1x4x2x2x8x8xf32, #tpu.memory_space<vmem>>, vector<1x4x2x2x1x8xf32>,
    return
  }
  func.func @transform_0(%arg0: i32, %arg1: i32) -> (i32, i32, i32, i32, i32, i32) {
    %c0_i32 = arith.constant 0 : i32
    %c0_i32_0 = arith.constant 0 : i32
    %c0_i32_1 = arith.constant 0 : i32
    %c0_i32_2 = arith.constant 0 : i32
    %c0_i32_3 = arith.constant 0 : i32
    return %arg0, %c0_i32, %arg1, %c0_i32_0, %c0_i32_1, %c0_i32_2 : i32, i32, i32, i32, i32, i32
  }
  func.func @transform_1(%arg0: i32, %arg1: i32) -> (i32, i32, i32, i32, i32, i32) {
    %c0_i32 = arith.constant 0 : i32
    %c0_i32_0 = arith.constant 0 : i32
    %c0_i32_1 = arith.constant 0 : i32
    %c0_i32_2 = arith.constant 0 : i32
    %c0_i32_3 = arith.constant 0 : i32
    return %arg0, %c0_i32, %arg1, %c0_i32_0, %c0_i32_1, %c0_i32_2 : i32, i32, i32, i32, i32, i32
  }
}

</mosaic_0001>

<bundles_post_ra>
// kernel: tpu_custom_call.1
= control target key start
LH: loop header
LB: loop body
LE: loop exit
PB: predicated region body
PF: predicated region fallthrough
CT: control target
= control target key end

     0   :  { %6 = vsyncpa [#allocation3], 0  ;;  %s1368_s0 = inlined_call_operand.hbm [shape: f32[2,4,2,8,2,8], index: 0, kind: input, shape index: {}]   ;;  %s1369_s1 = inlined_call_operand.hbm [shape: f32[2,4,2,2,8,8], index: 1, kind: output, shape index: {}]  }
   0x1   :  { %8 = vsyncpa [#allocation3 + $0x1], 0 }
   0x2   :  { %9 = vsyncpa [#allocation4], 0 }
   0x3   :  { %11 = vsyncpa [#allocation4 + $0x1], 0  ;;  %s923_s6 = smov 0   ;;  %s925_s7 = smov 0  }
   0x4   :  { %s927_s8 = smov 0   ;;  %s929_s9 = smov 0  }
   0x5   :  { %s931_s10 = smov 0   ;;  %s933_s11 = smov 0  }
   0x6 LB: > { %s656_s12 = sadd.s32 4294967295, %s907_s11   ;;  %s657_s13 = sadd.s32 4294967294, %s907_s11   ;;  %s907_s11 = sphi %s933_s11, %s17_s11   ;;  %s903_s10 = sphi %s931_s10, %s1378_s10   ;;  %s899_s9 = sphi %s929_s9, %s1377_s9   ;;  %s895_s8 = sphi %s927_s8, %s1376_s8   ;;  %s891_s7 = sphi %s925_s7, %s1375_s7   ;;  %s887_s6 = sphi %s923_s6, %s1374_s6  }
   0x7   : > { %s29_s14 = sadd.s32 1, %s903_s10  ;;  %s38_s15 = sadd.s32 1, %s895_s8 }
   0x8   : > { %p31_p0 = scmp.ge.s32.totalorder %s29_s14, 2  ;;  %p45_p1 = scmp.ne.s32.totalorder %s895_s8, %s891_s7 }
   0x9   : > { %p46_p2 = scmp.eq.s32.totalorder %s907_s11, 0  ;;  %p51_p3 = scmp.ne.s32.totalorder %s891_s7, %s887_s6 }
   0xa   : > { %s1380_s14 = smov (%p31_p0, %s29_s14), 0  ;;  %p52_p5 = scmp.eq.s32.totalorder %s656_s12, 0 }
   0xb   : > { %p964_p4 = por %p46_p2, %p45_p1  ;;  %s33_s17 = ssub.s32 %s903_s10, %s1380_s14 }
   0xc   : > { %p77_p6 = scmp.eq.s32.totalorder %s656_s12, 1  ;;  %p36_p7 = scmp.eq.s32.totalorder %s33_s17, 0 }
   0xd   : > { %p970_p8 = por %p52_p5, %p51_p3  ;;  %p83_p10 = scmp.eq.s32.totalorder %s657_s13, 1 }
   0xe   : > { %p974_p9 = por %p77_p6, %p45_p1  ;;  %p659_p12 = scmp.ge.s32.totalorder %s907_s11, 2 }
   0xf   : > { %s979_s20 = scalar_select %p36_p7, %s895_s8, %s38_s15  }
  0x10   : > { %p981_p11 = por %p83_p10, %p51_p3  ;;  %p741_p13 = scmp.lt.s32.totalorder %s907_s11, 2 }
  0x11   : > { %s103_s22 = sand.u32 1, %s895_s8   ;;  %s727_s24 = sshll.u32 %s903_s10, 7 }
  0x12   : > { %s660_s23 = sshll.u32 %s103_s22, 7  ;;  %s115_s27 = scalar_lea.hbm %s1368_s0, %s727_s24 }
  0x13   : > { %s107_s28 = scalar_lea.vmem [#allocation2], %s660_s23  ;;  %s116_s30 = sshll.u32 %s115_s27, 4  ;;  %s117_s30 = int_to_ptr.hbm [resolvable:$true] %s116_s30 }
  0x14   : > { %s118_s29 = sshll.u32 %s107_s28, 4  ;;  %p734_p0 = pnand %p741_p13, %p964_p4  ;;  %s119_s29 = int_to_ptr.vmem [resolvable:$true] %s118_s29 }
  0x15   : > { %p663_p1 = scmp.ge.s32.totalorder %s907_s11, 1  ;;  %s104_s2 = scalar_lea.sflag [#allocation3], %s103_s22 }
  0x16   : > { %s909_s3 = smov 32   ;;  %s910_s4 = smov 2  }
  0x17   : > { %736 = dma.hbm_to_vmem [thread:$0]  (!%p734_p0), %s117_s30, 2048, %s119_s29, %s104_s2, %s909_s3, %s909_s3, %s910_s4  }
  0x18   : > { %p126_p2 = scmp.lt.s32.totalorder %s907_s11, 3 }
  0x1a   : > { %p127_p3 = pnand %p663_p1, %p126_p2 }
  0x1b   : > { %s997_s5 = sand.u32 (!%p127_p3), 1, %s891_s7  }
  0x1c   : > { %130 = sbr.rel (%p127_p3) target bundleno = 167 (0xa7), region = 24  ;;  %s664_s12 = sshll.u32 (!%p127_p3), %s997_s5, 7 }
  0x1d   : > { %s133_s13 = scalar_lea.sflag (!%p127_p3), [#allocation3], %s997_s5  ;;  %s1001_s15 = scalar_lea.vmem (!%p127_p3), [#allocation2], %s664_s12 }
  0x21   : > { %878 = dma.done.wait (%p970_p8), %s133_s13, 2048  }
  0x22   : > { %880 = vsyncadd (%p970_p8), %s133_s13, 4294965248  ;;  %vm190_vm0 = vcmask 57344   ;;  %v158_v0 = vld [vmem:[%s1001_s15] sm:$0x3]  ;;  %v159_v1 = vld [vmem:[%s1001_s15 + $0x10] sm:$0x3] }
  0x23   : > { %v160_v2 = vld [vmem:[%s1001_s15 + $0x20] sm:$0x3]  ;;  %v174_v3 = vrot.slane %v158_v0, 1  ;;  %s1010_s16 = scalar_lea.vmem [#allocation5], %s664_s12  ;;  %v175_v4 = vrot.slane %v159_v1, 1  ;;  %s728_s17 = sshll.u32 %s899_s9, 7 }
  0x24   : > { %191 = vst.msk [vmem:[%s1010_s16] sm:$0x1] %vm190_vm0, %v158_v0  ;;  %v176_v5 = vrot.slane %v160_v2, 1  ;;  %v161_v6 = vld [vmem:[%s1001_s15 + $0x30] sm:$0x3]  ;;  %s565_s23 = scalar_lea.hbm %s1369_s1, %s728_s17  ;;  %s566_s9 = sshll.u32 %s1010_s16, 4  ;;  %s567_s9 = int_to_ptr.vmem [resolvable:$true] %s566_s9 }
  0x25   : > { %193 = vst.msk [vmem:[%s1010_s16 + $0x10] sm:$0x1] %vm190_vm0, %v159_v1  ;;  %v162_v7 = vld [vmem:[%s1001_s15 + $0x40] sm:$0x3]  ;;  %v177_v8 = vrot.slane %v161_v6, 1  ;;  %s568_s24 = sshll.u32 %s565_s23, 4  ;;  %s569_s24 = int_to_ptr.hbm [resolvable:$true] %s568_s24 }
  0x26   : > { %192 = vst.msk [vmem:[%s1010_s16 + $0x8] sm:$0x1] %vm190_vm0, %v174_v3  ;;  %v163_v9 = vld [vmem:[%s1001_s15 + $0x50] sm:$0x3]  ;;  %v178_v10 = vrot.slane %v162_v7, 1  ;;  %s551_s25 = scalar_lea.sflag [#allocation4], %s997_s5 }
  0x27   : > { %194 = vst.msk [vmem:[%s1010_s16 + $0x18] sm:$0x1] %vm190_vm0, %v175_v4  ;;  %v164_v11 = vld [vmem:[%s1001_s15 + $0x60] sm:$0x3]  ;;  %v179_v12 = vrot.slane %v163_v9, 1  ;;  %s839_s26 = sshra.s32 %s569_s24, 4  ;;  %s840_s26 = int_to_ptr.hbm [resolvable:$true] %s839_s26 }
  0x28   : > { %195 = vst.msk [vmem:[%s1010_s16 + $0x20] sm:$0x1] %vm190_vm0, %v160_v2  ;;  %v165_v13 = vld [vmem:[%s1001_s15 + $0x70] sm:$0x3]  ;;  %v180_v14 = vrot.slane %v164_v11, 1  ;;  %s841_s27 = scalar_lea.hbm %s840_s26, 128  ;;  %p846_p7 = scmp.lt.s32.totalorder %s840_s26, %s1369_s1 }
  0x29   : > { %196 = vst.msk [vmem:[%s1010_s16 + $0x28] sm:$0x1] %vm190_vm0, %v176_v5  ;;  %v666_v15 = vld [vmem:[%s1001_s15 + $0x2] sm:$0x3]  ;;  %v181_v16 = vrot.slane %v165_v13, 1  ;;  %p842_p4 = scmp.ne.s32.totalorder %s840_s26, %s841_s27  ;;  %s845_s30 = scalar_lea.hbm %s1369_s1, 256 }
  0x2a   : > { %197 = vst.msk [vmem:[%s1010_s16 + $0x30] sm:$0x1] %vm190_vm0, %v161_v6  ;;  %v667_v17 = vld [vmem:[%s1001_s15 + $0x12] sm:$0x3]  ;;  %v224_v18 = vrot.slane %v666_v15, 1  ;;  %p847_p8 = scmp.lt.s32.totalorder %s845_s30, %s841_s27 }
  0x2b   : > { %198 = vst.msk [vmem:[%s1010_s16 + $0x38] sm:$0x1] %vm190_vm0, %v177_v8  ;;  %v668_v19 = vld [vmem:[%s1001_s15 + $0x22] sm:$0x3]  ;;  %v225_v20 = vrot.slane %v667_v17, 1  ;;  %p843_p5 = pnand %p842_p4, %p974_p9 }
  0x2c   : > { %199 = vst.msk [vmem:[%s1010_s16 + $0x40] sm:$0x1] %vm190_vm0, %v162_v7  ;;  %v669_v21 = vld [vmem:[%s1001_s15 + $0x32] sm:$0x3]  ;;  %v226_v22 = vrot.slane %v668_v19, 1  ;;  %p848_p10 = por %p847_p8, %p846_p7 }
  0x2d   : > { %200 = vst.msk [vmem:[%s1010_s16 + $0x48] sm:$0x1] %vm190_vm0, %v178_v10  ;;  %v670_v23 = vld [vmem:[%s1001_s15 + $0x42] sm:$0x3]  ;;  %v227_v24 = vrot.slane %v669_v21, 1  ;;  %p844_p6 = pneg %p843_p5 }
  0x2e   : > { %201 = vst.msk [vmem:[%s1010_s16 + $0x50] sm:$0x1] %vm190_vm0, %v163_v9  ;;  %v671_v25 = vld [vmem:[%s1001_s15 + $0x52] sm:$0x3]  ;;  %v228_v26 = vrot.slane %v670_v23, 1 }
  0x2f   : > { %202 = vst.msk [vmem:[%s1010_s16 + $0x58] sm:$0x1] %vm190_vm0, %v179_v12  ;;  %v672_v27 = vld [vmem:[%s1001_s15 + $0x62] sm:$0x3]  ;;  %v229_v28 = vrot.slane %v671_v25, 1  ;;  %p849_p13 = pnand %p848_p10, %p844_p6 }
  0x30   : > { %203 = vst.msk [vmem:[%s1010_s16 + $0x60] sm:$0x1] %vm190_vm0, %v164_v11  ;;  %v673_v29 = vld [vmem:[%s1001_s15 + $0x72] sm:$0x3]  ;;  %v230_v30 = vrot.slane %v672_v27, 1 }
  0x31   : > { %204 = vst.msk [vmem:[%s1010_s16 + $0x68] sm:$0x1] %vm190_vm0, %v180_v14  ;;  %v674_v31 = vld [vmem:[%s1001_s15 + $0x4] sm:$0x3]  ;;  %v231_v32 = vrot.slane %v673_v29, 1 }
  0x32   : > { %205 = vst.msk [vmem:[%s1010_s16 + $0x70] sm:$0x1] %vm190_vm0, %v165_v13  ;;  %v675_v33 = vld [vmem:[%s1001_s15 + $0x14] sm:$0x3]  ;;  %v273_v34 = vrot.slane %v674_v31, 1 }
  0x33   : > { %206 = vst.msk [vmem:[%s1010_s16 + $0x78] sm:$0x1] %vm190_vm0, %v181_v16  ;;  %v676_v35 = vld [vmem:[%s1001_s15 + $0x24] sm:$0x3]  ;;  %v274_v36 = vrot.slane %v675_v33, 1 }
  0x34   : > { %240 = vst.msk [vmem:[%s1010_s16 + $0x1] sm:$0x1] %vm190_vm0, %v666_v15  ;;  %v677_v37 = vld [vmem:[%s1001_s15 + $0x34] sm:$0x3]  ;;  %v275_v38 = vrot.slane %v676_v35, 1 }
  0x35   : > { %241 = vst.msk [vmem:[%s1010_s16 + $0x9] sm:$0x1] %vm190_vm0, %v224_v18  ;;  %v678_v39 = vld [vmem:[%s1001_s15 + $0x44] sm:$0x3]  ;;  %v276_v40 = vrot.slane %v677_v37, 1 }
  0x36   : > { %242 = vst.msk [vmem:[%s1010_s16 + $0x11] sm:$0x1] %vm190_vm0, %v667_v17  ;;  %v679_v41 = vld [vmem:[%s1001_s15 + $0x54] sm:$0x3]  ;;  %v277_v42 = vrot.slane %v678_v39, 1 }
  0x37   : > { %243 = vst.msk [vmem:[%s1010_s16 + $0x19] sm:$0x1] %vm190_vm0, %v225_v20  ;;  %v680_v43 = vld [vmem:[%s1001_s15 + $0x64] sm:$0x3]  ;;  %v278_v44 = vrot.slane %v679_v41, 1 }
  0x38   : > { %244 = vst.msk [vmem:[%s1010_s16 + $0x21] sm:$0x1] %vm190_vm0, %v668_v19  ;;  %v681_v45 = vld [vmem:[%s1001_s15 + $0x74] sm:$0x3]  ;;  %v279_v46 = vrot.slane %v680_v43, 1 }
  0x39   : > { %245 = vst.msk [vmem:[%s1010_s16 + $0x29] sm:$0x1] %vm190_vm0, %v226_v22  ;;  %v682_v47 = vld [vmem:[%s1001_s15 + $0x6] sm:$0x3]  ;;  %v280_v48 = vrot.slane %v681_v45, 1 }
  0x3a   : > { %246 = vst.msk [vmem:[%s1010_s16 + $0x31] sm:$0x1] %vm190_vm0, %v669_v21  ;;  %v683_v49 = vld [vmem:[%s1001_s15 + $0x16] sm:$0x3]  ;;  %v322_v50 = vrot.slane %v682_v47, 1 }
  0x3b   : > { %247 = vst.msk [vmem:[%s1010_s16 + $0x39] sm:$0x1] %vm190_vm0, %v227_v24  ;;  %v684_v51 = vld [vmem:[%s1001_s15 + $0x26] sm:$0x3]  ;;  %v323_v52 = vrot.slane %v683_v49, 1 }
  0x3c   : > { %248 = vst.msk [vmem:[%s1010_s16 + $0x41] sm:$0x1] %vm190_vm0, %v670_v23  ;;  %v685_v53 = vld [vmem:[%s1001_s15 + $0x36] sm:$0x3]  ;;  %v324_v54 = vrot.slane %v684_v51, 1 }
  0x3d   : > { %249 = vst.msk [vmem:[%s1010_s16 + $0x49] sm:$0x1] %vm190_vm0, %v228_v26  ;;  %v686_v55 = vld [vmem:[%s1001_s15 + $0x46] sm:$0x3]  ;;  %v325_v56 = vrot.slane %v685_v53, 1 }
  0x3e   : > { %250 = vst.msk [vmem:[%s1010_s16 + $0x51] sm:$0x1] %vm190_vm0, %v671_v25  ;;  %v687_v57 = vld [vmem:[%s1001_s15 + $0x56] sm:$0x3]  ;;  %v326_v58 = vrot.slane %v686_v55, 1 }
  0x3f   : > { %251 = vst.msk [vmem:[%s1010_s16 + $0x59] sm:$0x1] %vm190_vm0, %v229_v28  ;;  %v688_v59 = vld [vmem:[%s1001_s15 + $0x66] sm:$0x3]  ;;  %v327_v60 = vrot.slane %v687_v57, 1 }
  0x40   : > { %252 = vst.msk [vmem:[%s1010_s16 + $0x61] sm:$0x1] %vm190_vm0, %v672_v27  ;;  %v689_v61 = vld [vmem:[%s1001_s15 + $0x76] sm:$0x3]  ;;  %v328_v62 = vrot.slane %v688_v59, 1 }
  0x41   : > { %253 = vst.msk [vmem:[%s1010_s16 + $0x69] sm:$0x1] %vm190_vm0, %v230_v30  ;;  %v690_v63 = vld [vmem:[%s1001_s15 + $0x8] sm:$0x3]  ;;  %v329_v0 = vrot.slane %v689_v61, 1 }
  0x42   : > { %254 = vst.msk [vmem:[%s1010_s16 + $0x71] sm:$0x1] %vm190_vm0, %v673_v29  ;;  %v691_v1 = vld [vmem:[%s1001_s15 + $0x18] sm:$0x3]  ;;  %v371_v2 = vrot.slane %v690_v63, 1 }
  0x43   : > { %255 = vst.msk [vmem:[%s1010_s16 + $0x79] sm:$0x1] %vm190_vm0, %v231_v32  ;;  %v692_v3 = vld [vmem:[%s1001_s15 + $0x28] sm:$0x3]  ;;  %v372_v4 = vrot.slane %v691_v1, 1 }
  0x44   : > { %289 = vst.msk [vmem:[%s1010_s16 + $0x2] sm:$0x1] %vm190_vm0, %v674_v31  ;;  %v693_v5 = vld [vmem:[%s1001_s15 + $0x38] sm:$0x3]  ;;  %v373_v6 = vrot.slane %v692_v3, 1 }
  0x45   : > { %290 = vst.msk [vmem:[%s1010_s16 + $0xa] sm:$0x1] %vm190_vm0, %v273_v34  ;;  %v694_v7 = vld [vmem:[%s1001_s15 + $0x48] sm:$0x3]  ;;  %v374_v8 = vrot.slane %v693_v5, 1 }
  0x46   : > { %291 = vst.msk [vmem:[%s1010_s16 + $0x12] sm:$0x1] %vm190_vm0, %v675_v33  ;;  %v695_v9 = vld [vmem:[%s1001_s15 + $0x58] sm:$0x3]  ;;  %v375_v10 = vrot.slane %v694_v7, 1 }
  0x47   : > { %292 = vst.msk [vmem:[%s1010_s16 + $0x1a] sm:$0x1] %vm190_vm0, %v274_v36  ;;  %v696_v11 = vld [vmem:[%s1001_s15 + $0x68] sm:$0x3]  ;;  %v376_v12 = vrot.slane %v695_v9, 1 }
  0x48   : > { %293 = vst.msk [vmem:[%s1010_s16 + $0x22] sm:$0x1] %vm190_vm0, %v676_v35  ;;  %v697_v13 = vld [vmem:[%s1001_s15 + $0x78] sm:$0x3]  ;;  %v377_v14 = vrot.slane %v696_v11, 1 }
  0x49   : > { %294 = vst.msk [vmem:[%s1010_s16 + $0x2a] sm:$0x1] %vm190_vm0, %v275_v38  ;;  %v698_v15 = vld [vmem:[%s1001_s15 + $0xa] sm:$0x3]  ;;  %v378_v16 = vrot.slane %v697_v13, 1 }
  0x4a   : > { %295 = vst.msk [vmem:[%s1010_s16 + $0x32] sm:$0x1] %vm190_vm0, %v677_v37  ;;  %v699_v17 = vld [vmem:[%s1001_s15 + $0x1a] sm:$0x3]  ;;  %v420_v18 = vrot.slane %v698_v15, 1 }
  0x4b   : > { %296 = vst.msk [vmem:[%s1010_s16 + $0x3a] sm:$0x1] %vm190_vm0, %v276_v40  ;;  %v700_v19 = vld [vmem:[%s1001_s15 + $0x2a] sm:$0x3]  ;;  %v421_v20 = vrot.slane %v699_v17, 1 }
  0x4c   : > { %297 = vst.msk [vmem:[%s1010_s16 + $0x42] sm:$0x1] %vm190_vm0, %v678_v39  ;;  %v701_v21 = vld [vmem:[%s1001_s15 + $0x3a] sm:$0x3]  ;;  %v422_v22 = vrot.slane %v700_v19, 1 }
  0x4d   : > { %298 = vst.msk [vmem:[%s1010_s16 + $0x4a] sm:$0x1] %vm190_vm0, %v277_v42  ;;  %v702_v23 = vld [vmem:[%s1001_s15 + $0x4a] sm:$0x3]  ;;  %v423_v24 = vrot.slane %v701_v21, 1 }
  0x4e   : > { %299 = vst.msk [vmem:[%s1010_s16 + $0x52] sm:$0x1] %vm190_vm0, %v679_v41  ;;  %v703_v25 = vld [vmem:[%s1001_s15 + $0x5a] sm:$0x3]  ;;  %v424_v26 = vrot.slane %v702_v23, 1 }
  0x4f   : > { %300 = vst.msk [vmem:[%s1010_s16 + $0x5a] sm:$0x1] %vm190_vm0, %v278_v44  ;;  %v704_v27 = vld [vmem:[%s1001_s15 + $0x6a] sm:$0x3]  ;;  %v425_v28 = vrot.slane %v703_v25, 1 }
  0x50   : > { %301 = vst.msk [vmem:[%s1010_s16 + $0x62] sm:$0x1] %vm190_vm0, %v680_v43  ;;  %v705_v29 = vld [vmem:[%s1001_s15 + $0x7a] sm:$0x3]  ;;  %v426_v30 = vrot.slane %v704_v27, 1 }
  0x51   : > { %302 = vst.msk [vmem:[%s1010_s16 + $0x6a] sm:$0x1] %vm190_vm0, %v279_v46  ;;  %v706_v31 = vld [vmem:[%s1001_s15 + $0xc] sm:$0x3]  ;;  %v427_v32 = vrot.slane %v705_v29, 1 }
  0x52   : > { %303 = vst.msk [vmem:[%s1010_s16 + $0x72] sm:$0x1] %vm190_vm0, %v681_v45  ;;  %v707_v33 = vld [vmem:[%s1001_s15 + $0x1c] sm:$0x3]  ;;  %v469_v34 = vrot.slane %v706_v31, 1 }
  0x53   : > { %304 = vst.msk [vmem:[%s1010_s16 + $0x7a] sm:$0x1] %vm190_vm0, %v280_v48  ;;  %v708_v35 = vld [vmem:[%s1001_s15 + $0x2c] sm:$0x3]  ;;  %v470_v36 = vrot.slane %v707_v33, 1 }
  0x54   : > { %338 = vst.msk [vmem:[%s1010_s16 + $0x3] sm:$0x1] %vm190_vm0, %v682_v47  ;;  %v709_v37 = vld [vmem:[%s1001_s15 + $0x3c] sm:$0x3]  ;;  %v471_v38 = vrot.slane %v708_v35, 1 }
  0x55   : > { %339 = vst.msk [vmem:[%s1010_s16 + $0xb] sm:$0x1] %vm190_vm0, %v322_v50  ;;  %v710_v39 = vld [vmem:[%s1001_s15 + $0x4c] sm:$0x3]  ;;  %v472_v40 = vrot.slane %v709_v37, 1 }
  0x56   : > { %340 = vst.msk [vmem:[%s1010_s16 + $0x13] sm:$0x1] %vm190_vm0, %v683_v49  ;;  %v711_v41 = vld [vmem:[%s1001_s15 + $0x5c] sm:$0x3]  ;;  %v473_v42 = vrot.slane %v710_v39, 1 }
  0x57   : > { %341 = vst.msk [vmem:[%s1010_s16 + $0x1b] sm:$0x1] %vm190_vm0, %v323_v52  ;;  %v712_v43 = vld [vmem:[%s1001_s15 + $0x6c] sm:$0x3]  ;;  %v474_v44 = vrot.slane %v711_v41, 1 }
  0x58   : > { %342 = vst.msk [vmem:[%s1010_s16 + $0x23] sm:$0x1] %vm190_vm0, %v684_v51  ;;  %v713_v45 = vld [vmem:[%s1001_s15 + $0x7c] sm:$0x3]  ;;  %v475_v46 = vrot.slane %v712_v43, 1 }
  0x59   : > { %343 = vst.msk [vmem:[%s1010_s16 + $0x2b] sm:$0x1] %vm190_vm0, %v324_v54  ;;  %v714_v47 = vld [vmem:[%s1001_s15 + $0xe] sm:$0x3]  ;;  %v476_v48 = vrot.slane %v713_v45, 1 }
  0x5a   : > { %344 = vst.msk [vmem:[%s1010_s16 + $0x33] sm:$0x1] %vm190_vm0, %v685_v53  ;;  %v715_v49 = vld [vmem:[%s1001_s15 + $0x1e] sm:$0x3]  ;;  %v518_v50 = vrot.slane %v714_v47, 1 }
  0x5b   : > { %345 = vst.msk [vmem:[%s1010_s16 + $0x3b] sm:$0x1] %vm190_vm0, %v325_v56  ;;  %v716_v51 = vld [vmem:[%s1001_s15 + $0x2e] sm:$0x3]  ;;  %v519_v52 = vrot.slane %v715_v49, 1 }
  0x5c   : > { %346 = vst.msk [vmem:[%s1010_s16 + $0x43] sm:$0x1] %vm190_vm0, %v686_v55  ;;  %v717_v53 = vld [vmem:[%s1001_s15 + $0x3e] sm:$0x3]  ;;  %v520_v54 = vrot.slane %v716_v51, 1 }
  0x5d   : > { %347 = vst.msk [vmem:[%s1010_s16 + $0x4b] sm:$0x1] %vm190_vm0, %v326_v58  ;;  %v718_v55 = vld [vmem:[%s1001_s15 + $0x4e] sm:$0x3]  ;;  %v521_v56 = vrot.slane %v717_v53, 1 }
  0x5e   : > { %348 = vst.msk [vmem:[%s1010_s16 + $0x53] sm:$0x1] %vm190_vm0, %v687_v57  ;;  %v719_v57 = vld [vmem:[%s1001_s15 + $0x5e] sm:$0x3]  ;;  %v522_v58 = vrot.slane %v718_v55, 1 }
  0x5f   : > { %349 = vst.msk [vmem:[%s1010_s16 + $0x5b] sm:$0x1] %vm190_vm0, %v327_v60  ;;  %v523_v60 = vrot.slane %v719_v57, 1 }
  0x60   : > { %350 = vst.msk [vmem:[%s1010_s16 + $0x63] sm:$0x1] %vm190_vm0, %v688_v59  ;;  %v720_v59 = vld [vmem:[%s1001_s15 + $0x6e] sm:$0x3] }
  0x61   : > { %351 = vst.msk [vmem:[%s1010_s16 + $0x6b] sm:$0x1] %vm190_vm0, %v328_v62  ;;  %v524_v62 = vrot.slane %v720_v59, 1 }
  0x62   : > { %352 = vst.msk [vmem:[%s1010_s16 + $0x73] sm:$0x1] %vm190_vm0, %v689_v61  ;;  %v721_v61 = vld [vmem:[%s1001_s15 + $0x7e] sm:$0x3] }
  0x63   : > { %353 = vst.msk [vmem:[%s1010_s16 + $0x7b] sm:$0x1] %vm190_vm0, %v329_v0 }
  0x64   : > { %387 = vst.msk [vmem:[%s1010_s16 + $0x4] sm:$0x1] %vm190_vm0, %v690_v63  ;;  %v525_v63 = vrot.slane %v721_v61, 1 }
  0x65   : > { %388 = vst.msk [vmem:[%s1010_s16 + $0xc] sm:$0x1] %vm190_vm0, %v371_v2 }
  0x66   : > { %389 = vst.msk [vmem:[%s1010_s16 + $0x14] sm:$0x1] %vm190_vm0, %v691_v1 }
  0x67   : > { %390 = vst.msk [vmem:[%s1010_s16 + $0x1c] sm:$0x1] %vm190_vm0, %v372_v4 }
  0x68   : > { %391 = vst.msk [vmem:[%s1010_s16 + $0x24] sm:$0x1] %vm190_vm0, %v692_v3 }
  0x69   : > { %392 = vst.msk [vmem:[%s1010_s16 + $0x2c] sm:$0x1] %vm190_vm0, %v373_v6 }
  0x6a   : > { %393 = vst.msk [vmem:[%s1010_s16 + $0x34] sm:$0x1] %vm190_vm0, %v693_v5 }
  0x6b   : > { %394 = vst.msk [vmem:[%s1010_s16 + $0x3c] sm:$0x1] %vm190_vm0, %v374_v8 }
  0x6c   : > { %395 = vst.msk [vmem:[%s1010_s16 + $0x44] sm:$0x1] %vm190_vm0, %v694_v7 }
  0x6d   : > { %396 = vst.msk [vmem:[%s1010_s16 + $0x4c] sm:$0x1] %vm190_vm0, %v375_v10 }
  0x6e   : > { %397 = vst.msk [vmem:[%s1010_s16 + $0x54] sm:$0x1] %vm190_vm0, %v695_v9 }
  0x6f   : > { %398 = vst.msk [vmem:[%s1010_s16 + $0x5c] sm:$0x1] %vm190_vm0, %v376_v12 }
  0x70   : > { %399 = vst.msk [vmem:[%s1010_s16 + $0x64] sm:$0x1] %vm190_vm0, %v696_v11 }
  0x71   : > { %400 = vst.msk [vmem:[%s1010_s16 + $0x6c] sm:$0x1] %vm190_vm0, %v377_v14 }
  0x72   : > { %401 = vst.msk [vmem:[%s1010_s16 + $0x74] sm:$0x1] %vm190_vm0, %v697_v13 }
  0x73   : > { %402 = vst.msk [vmem:[%s1010_s16 + $0x7c] sm:$0x1] %vm190_vm0, %v378_v16 }
  0x74   : > { %436 = vst.msk [vmem:[%s1010_s16 + $0x5] sm:$0x1] %vm190_vm0, %v698_v15 }
  0x75   : > { %437 = vst.msk [vmem:[%s1010_s16 + $0xd] sm:$0x1] %vm190_vm0, %v420_v18 }
  0x76   : > { %438 = vst.msk [vmem:[%s1010_s16 + $0x15] sm:$0x1] %vm190_vm0, %v699_v17 }
  0x77   : > { %439 = vst.msk [vmem:[%s1010_s16 + $0x1d] sm:$0x1] %vm190_vm0, %v421_v20 }
  0x78   : > { %440 = vst.msk [vmem:[%s1010_s16 + $0x25] sm:$0x1] %vm190_vm0, %v700_v19 }
  0x79   : > { %441 = vst.msk [vmem:[%s1010_s16 + $0x2d] sm:$0x1] %vm190_vm0, %v422_v22 }
  0x7a   : > { %442 = vst.msk [vmem:[%s1010_s16 + $0x35] sm:$0x1] %vm190_vm0, %v701_v21 }
  0x7b   : > { %443 = vst.msk [vmem:[%s1010_s16 + $0x3d] sm:$0x1] %vm190_vm0, %v423_v24 }
  0x7c   : > { %444 = vst.msk [vmem:[%s1010_s16 + $0x45] sm:$0x1] %vm190_vm0, %v702_v23 }
  0x7d   : > { %445 = vst.msk [vmem:[%s1010_s16 + $0x4d] sm:$0x1] %vm190_vm0, %v424_v26 }
  0x7e   : > { %446 = vst.msk [vmem:[%s1010_s16 + $0x55] sm:$0x1] %vm190_vm0, %v703_v25 }
  0x7f   : > { %447 = vst.msk [vmem:[%s1010_s16 + $0x5d] sm:$0x1] %vm190_vm0, %v425_v28 }
  0x80   : > { %448 = vst.msk [vmem:[%s1010_s16 + $0x65] sm:$0x1] %vm190_vm0, %v704_v27 }
  0x81   : > { %449 = vst.msk [vmem:[%s1010_s16 + $0x6d] sm:$0x1] %vm190_vm0, %v426_v30 }
  0x82   : > { %450 = vst.msk [vmem:[%s1010_s16 + $0x75] sm:$0x1] %vm190_vm0, %v705_v29 }
  0x83   : > { %451 = vst.msk [vmem:[%s1010_s16 + $0x7d] sm:$0x1] %vm190_vm0, %v427_v32 }
  0x84   : > { %485 = vst.msk [vmem:[%s1010_s16 + $0x6] sm:$0x1] %vm190_vm0, %v706_v31 }
  0x85   : > { %486 = vst.msk [vmem:[%s1010_s16 + $0xe] sm:$0x1] %vm190_vm0, %v469_v34 }
  0x86   : > { %487 = vst.msk [vmem:[%s1010_s16 + $0x16] sm:$0x1] %vm190_vm0, %v707_v33 }
  0x87   : > { %488 = vst.msk [vmem:[%s1010_s16 + $0x1e] sm:$0x1] %vm190_vm0, %v470_v36 }
  0x88   : > { %489 = vst.msk [vmem:[%s1010_s16 + $0x26] sm:$0x1] %vm190_vm0, %v708_v35 }
  0x89   : > { %490 = vst.msk [vmem:[%s1010_s16 + $0x2e] sm:$0x1] %vm190_vm0, %v471_v38 }
  0x8a   : > { %491 = vst.msk [vmem:[%s1010_s16 + $0x36] sm:$0x1] %vm190_vm0, %v709_v37 }
  0x8b   : > { %492 = vst.msk [vmem:[%s1010_s16 + $0x3e] sm:$0x1] %vm190_vm0, %v472_v40 }
  0x8c   : > { %493 = vst.msk [vmem:[%s1010_s16 + $0x46] sm:$0x1] %vm190_vm0, %v710_v39 }
  0x8d   : > { %494 = vst.msk [vmem:[%s1010_s16 + $0x4e] sm:$0x1] %vm190_vm0, %v473_v42 }
  0x8e   : > { %495 = vst.msk [vmem:[%s1010_s16 + $0x56] sm:$0x1] %vm190_vm0, %v711_v41 }
  0x8f   : > { %496 = vst.msk [vmem:[%s1010_s16 + $0x5e] sm:$0x1] %vm190_vm0, %v474_v44 }
  0x90   : > { %497 = vst.msk [vmem:[%s1010_s16 + $0x66] sm:$0x1] %vm190_vm0, %v712_v43 }
  0x91   : > { %498 = vst.msk [vmem:[%s1010_s16 + $0x6e] sm:$0x1] %vm190_vm0, %v475_v46 }
  0x92   : > { %499 = vst.msk [vmem:[%s1010_s16 + $0x76] sm:$0x1] %vm190_vm0, %v713_v45 }
  0x93   : > { %500 = vst.msk [vmem:[%s1010_s16 + $0x7e] sm:$0x1] %vm190_vm0, %v476_v48 }
  0x94   : > { %534 = vst.msk [vmem:[%s1010_s16 + $0x7] sm:$0x1] %vm190_vm0, %v714_v47 }
  0x95   : > { %535 = vst.msk [vmem:[%s1010_s16 + $0xf] sm:$0x1] %vm190_vm0, %v518_v50 }
  0x96   : > { %536 = vst.msk [vmem:[%s1010_s16 + $0x17] sm:$0x1] %vm190_vm0, %v715_v49 }
  0x97   : > { %537 = vst.msk [vmem:[%s1010_s16 + $0x1f] sm:$0x1] %vm190_vm0, %v519_v52 }
  0x98   : > { %538 = vst.msk [vmem:[%s1010_s16 + $0x27] sm:$0x1] %vm190_vm0, %v716_v51 }
  0x99   : > { %539 = vst.msk [vmem:[%s1010_s16 + $0x2f] sm:$0x1] %vm190_vm0, %v520_v54 }
  0x9a   : > { %540 = vst.msk [vmem:[%s1010_s16 + $0x37] sm:$0x1] %vm190_vm0, %v717_v53 }
  0x9b   : > { %541 = vst.msk [vmem:[%s1010_s16 + $0x3f] sm:$0x1] %vm190_vm0, %v521_v56 }
  0x9c   : > { %542 = vst.msk [vmem:[%s1010_s16 + $0x47] sm:$0x1] %vm190_vm0, %v718_v55 }
  0x9d   : > { %543 = vst.msk [vmem:[%s1010_s16 + $0x4f] sm:$0x1] %vm190_vm0, %v522_v58 }
  0x9e   : > { %544 = vst.msk [vmem:[%s1010_s16 + $0x57] sm:$0x1] %vm190_vm0, %v719_v57 }
  0x9f   : > { %545 = vst.msk [vmem:[%s1010_s16 + $0x5f] sm:$0x1] %vm190_vm0, %v523_v60 }
  0xa0   : > { %546 = vst.msk [vmem:[%s1010_s16 + $0x67] sm:$0x1] %vm190_vm0, %v720_v59 }
  0xa1   : > { %547 = vst.msk [vmem:[%s1010_s16 + $0x6f] sm:$0x1] %vm190_vm0, %v524_v62 }
  0xa2   : > { %548 = vst.msk [vmem:[%s1010_s16 + $0x77] sm:$0x1] %vm190_vm0, %v721_v61 }
  0xa3   : > { %549 = vst.msk [vmem:[%s1010_s16 + $0x7f] sm:$0x1] %vm190_vm0, %v525_v63 }
  0xa4   : > { %852 = shalt.err (!%p849_p13)
}
  0xa5   : > { %s911_s4 = smov 128   ;;  %s912_s5 = smov 8  }
  0xa6   : > { %731 = dma.vmem_to_hbm [thread:$0]  (%p974_p9), %s567_s9, 2048, %s569_s24, %s551_s25, %s911_s4, %s911_s4, %s912_s5  }
  0xa7 PF: > { %s583_s12 = sand.u32 1, %s887_s6   ;;  %p738_p0 = pnand %p659_p12, %p981_p11 }
  0xa8   : > { %s584_s13 = scalar_lea.sflag [#allocation4], %s583_s12 }
  0xa9   : > { %p739_p1 = pneg %p738_p0 }
  0xab   : > { %882 = dma.done.wait (%p739_p1), %s584_s13, 2048  }
  0xac   : > { %884 = vsyncadd (%p739_p1), %s584_s13, 4294965248  ;;  %s17_s11 = sadd.s32 1, %s907_s11   ;;  %s1374_s6 = smov %s891_s7 }
  0xad   : > { %p14_p2 = scmp.ge.s32.totalorder %s17_s11, 4   ;;  %s1375_s7 = smov %s895_s8 }
  0xae   : > { %s1376_s8 = smov %s979_s20  ;;  %s1377_s9 = smov %s903_s10 }
  0xaf   : > { %s1378_s10 = smov %s1380_s14  ;;  %16 = sbr.rel (!%p14_p2) target bundleno = 6 (0x6), region = 76 }
  0xb4   :  { %590 = vsyncpa [#allocation3], 1 }
  0xb5   :  { %592 = vsyncpa [#allocation3 + $0x1], 1 }
  0xb6   :  { %593 = vsyncpa [#allocation4], 1 }
  0xb7   :  { %595 = vsyncpa [#allocation4 + $0x1], 1 }

</bundles_post_ra>
